<compile_context>
chip_gen: v6e
topology: v6e:2x2x1
jax: 0.10.0
libtpu: 0.0.40
codegen_flags: <defaults>
</compile_context>

<pallas_src>
import functools

import jax
import jax.numpy as jnp
from jax.experimental import pallas as pl
from jax.experimental.pallas import tpu as pltpu


def mlp_kernel(x_ref, w1_ref, b1_ref, w2_ref, b2_ref, o_ref):
    # fc1 on the MXU: bf16 operands, f32 accumulation.
    xb = x_ref[...].astype(jnp.bfloat16)
    h = jnp.dot(xb, w1_ref[...], preferred_element_type=jnp.float32)
    # Bias + ReLU epilogue in f32 on the accumulator (VPU).
    h = jnp.maximum(h + b1_ref[...], 0.0)
    # fc2: bf16 round-trip on the activation to feed the MXU; f32 accumulate.
    out = jnp.dot(h.astype(jnp.bfloat16), w2_ref[...],
                  preferred_element_type=jnp.float32)
    o_ref[...] = (out + b2_ref[...]).astype(o_ref.dtype)


def _round_up(n, m):
    return ((n + m - 1) // m) * m


@functools.partial(jax.jit, static_argnames=("block_m",))
def mlp_forward(x, w1, b1, w2, b2, *, block_m=256):
    B, D_in = x.shape
    H = w1.shape[1]
    D_out = w2.shape[1]

    # Lane-dense fc2 output: pad output features to a multiple of 128 so the
    # final store is an unmasked, full-lane store (not a 2-wide masked vst).
    D_pad = _round_up(max(D_out, 128), 128)

    # Batch tile: multiple of 8 sublanes, capped at block_m (256 fills the MXU
    # rows on v6e/v7x; also fine on v5e at these small feature sizes).
    tm = min(_round_up(B, 8), block_m)
    B_pad = _round_up(B, tm)

    # Pad operands only when needed; padded rows/cols are sliced off afterward.
    x_p = x if B_pad == B else jnp.pad(x, ((0, B_pad - B), (0, 0)))
    if D_pad == D_out:
        w2_p = w2
        b2_p = b2.reshape(1, -1)
    else:
        w2_p = jnp.pad(w2, ((0, 0), (0, D_pad - D_out)))
        b2_p = jnp.pad(b2.reshape(1, -1), ((0, 0), (0, D_pad - D_out)))
    b1_p = b1.reshape(1, -1)

    # bf16 weights for the MXU (f32 accumulation inside the kernel).
    w1_b = w1.astype(jnp.bfloat16)
    w2_b = w2_p.astype(jnp.bfloat16)

    grid = (B_pad // tm,)

    flops = 2 * B_pad * D_in * H + 2 * B_pad * H * D_pad
    bytes_accessed = (x_p.size * 4 + w1_b.size * 2 + b1_p.size * 4 +
                      w2_b.size * 2 + b2_p.size * 4 + B_pad * D_pad * 4)

    out = pl.pallas_call(
        mlp_kernel,
        out_shape=jax.ShapeDtypeStruct((B_pad, D_pad), jnp.float32),
        grid=grid,
        in_specs=[
            pl.BlockSpec((tm, D_in), lambda i: (i, 0)),   # activations stream over batch
            pl.BlockSpec((D_in, H), lambda i: (0, 0)),    # w1 resident across grid steps
            pl.BlockSpec((1, H), lambda i: (0, 0)),       # b1 resident
            pl.BlockSpec((H, D_pad), lambda i: (0, 0)),   # w2 resident
            pl.BlockSpec((1, D_pad), lambda i: (0, 0)),   # b2 resident
        ],
        out_specs=pl.BlockSpec((tm, D_pad), lambda i: (i, 0)),
        compiler_params=pltpu.CompilerParams(
            dimension_semantics=("parallel",),            # shard batch tiles over TCs (v7x)
            vmem_limit_bytes=32 * 1024 * 1024),           # fits v7x 32 MiB scoped VMEM
        cost_estimate=pl.CostEstimate(
            flops=flops, transcendentals=0, bytes_accessed=bytes_accessed),
    )(x_p, w1_b, b1_p, w2_b, b2_p)

    return out[:B, :D_out]


if __name__ == "__main__":
    # Shapes implied by the module: x = (batch, input_dim), hidden_dim=64, output_dim=2.
    batch, input_dim, hidden_dim, output_dim = 8, 32, 64, 2

    key = jax.random.PRNGKey(0)
    kx, kw1, kb1, kw2, kb2 = jax.random.split(key, 5)

    # PyTorch nn.Linear default init: U(-1/sqrt(fan_in), 1/sqrt(fan_in)).
    bound1 = 1.0 / (input_dim ** 0.5)
    bound2 = 1.0 / (hidden_dim ** 0.5)
    x = jax.random.normal(kx, (batch, input_dim), jnp.float32)
    w1 = jax.random.uniform(kw1, (input_dim, hidden_dim), jnp.float32, -bound1, bound1)
    b1 = jax.random.uniform(kb1, (hidden_dim,), jnp.float32, -bound1, bound1)
    w2 = jax.random.uniform(kw2, (hidden_dim, output_dim), jnp.float32, -bound2, bound2)
    b2 = jax.random.uniform(kb2, (output_dim,), jnp.float32, -bound2, bound2)

    out = jax.block_until_ready(mlp_forward(x, w1, b1, w2, b2))
    assert out.shape == (batch, output_dim)

    # Reference matched to the kernel's bf16-in / f32-accumulate MXU path.
    def _bf(a):
        return a.astype(jnp.bfloat16).astype(jnp.float32)

    h_ref = jnp.maximum(_bf(x) @ _bf(w1) + b1, 0.0)
    ref_bf16 = _bf(h_ref) @ _bf(w2) + b2
    assert jnp.allclose(out, ref_bf16, atol=1e-3, rtol=1e-3), \
        float(jnp.max(jnp.abs(out - ref_bf16)))

    # Sanity check against the full-f32 PyTorch-equivalent forward.
    ref_f32 = jnp.maximum(x @ w1 + b1, 0.0) @ w2 + b2
    assert jnp.allclose(out, ref_f32, atol=1e-1, rtol=1e-1)

    print("KERNEL_OK")
</pallas_src>

<mosaic_0001>
module attributes {stable_mosaic.version = 11 : i64} {
  func.func @mlp_kernel(%arg0: i32, %arg1: memref<8x32xf32, #tpu.memory_space<vmem>>, %arg2: memref<32x64xbf16, #tpu.memory_space<vmem>>, %arg3: memref<1x64xf32, #tpu.memory_space<vmem>>, %arg4: memref<64x128xbf16, #tpu.memory_space<vmem>>, %arg5: memref<1x128xf32, #tpu.memory_space<vmem>>, %arg6: memref<8x128xf32, #tpu.memory_space<vmem>>) attributes {dimension_semantics = [#tpu.dimension_semantics<parallel>], iteration_bounds = array<i64: 1>, scalar_prefetch = 0 : i64, scratch_operands = 0 : i64, tpu.core_type = #tpu.core_type<tc>, window_params = [{transform_indices = @transform_0, window_bounds = array<i64: 8, 32>}, {pipeline_mode = #tpu.pipeline_mode<synchronous>, transform_indices = @transform_1, window_bounds = array<i64: 32, 64>}, {pipeline_mode = #tpu.pipeline_mode<synchronous>, transform_indices = @transform_2, window_bounds = array<i64: 1, 64>}, {pipeline_mode = #tpu.pipeline_mode<synchronous>, transform_indices = @transform_3, window_bounds = array<i64: 64, 128>}, {pipeline_mode = #tpu.pipeline_mode<synchronous>, transform_indices = @transform_4, window_bounds = array<i64: 1, 128>}, {transform_indices = @transform_5, window_bounds = array<i64: 8, 128>}]} {
    %c0 = arith.constant 0 : index
    %c0_0 = arith.constant 0 : index
    %0 = vector.load %arg1[%c0, %c0_0] : memref<8x32xf32, #tpu.memory_space<vmem>>, vector<8x32xf32>
    %1 = arith.truncf %0 : vector<8x32xf32> to vector<8x32xbf16>
    %c0_1 = arith.constant 0 : index
    %c0_2 = arith.constant 0 : index
    %2 = vector.load %arg2[%c0_1, %c0_2] : memref<32x64xbf16, #tpu.memory_space<vmem>>, vector<32x64xbf16>
    %cst = arith.constant dense<0.000000e+00> : vector<8x64xf32>
    %3 = tpu.matmul %1, %2, %cst {dimension_numbers = #tpu.dot_dimension_numbers<[1], [0], [0], [1], [0, 0, 1, 1], [], []>} : vector<8x32xbf16>, vector<32x64xbf16>, vector<8x64xf32> -> vector<8x64xf32>
    %c0_3 = arith.constant 0 : index
    %c0_4 = arith.constant 0 : index
    %4 = vector.load %arg3[%c0_3, %c0_4] : memref<1x64xf32, #tpu.memory_space<vmem>>, vector<1x64xf32>
    %5 = vector.broadcast %4 : vector<1x64xf32> to vector<8x64xf32>
    %6 = arith.addf %3, %5 : vector<8x64xf32>
    %cst_5 = arith.constant 0.000000e+00 : f32
    %7 = vector.broadcast %cst_5 : f32 to vector<8x64xf32>
    %8 = arith.maximumf %6, %7 : vector<8x64xf32>
    %9 = arith.truncf %8 : vector<8x64xf32> to vector<8x64xbf16>
    %c0_6 = arith.constant 0 : index
    %c0_7 = arith.constant 0 : index
    %10 = vector.load %arg4[%c0_6, %c0_7] : memref<64x128xbf16, #tpu.memory_space<vmem>>, vector<64x128xbf16>
    %cst_8 = arith.constant dense<0.000000e+00> : vector<8x128xf32>
    %11 = tpu.matmul %9, %10, %cst_8 {dimension_numbers = #tpu.dot_dimension_numbers<[1], [0], [0], [1], [0, 0, 1, 1], [], []>} : vector<8x64xbf16>, vector<64x128xbf16>, vector<8x128xf32> -> vector<8x128xf32>
    %c0_9 = arith.constant 0 : index
    %c0_10 = arith.constant 0 : index
    %12 = vector.load %arg5[%c0_9, %c0_10] : memref<1x128xf32, #tpu.memory_space<vmem>>, vector<1x128xf32>
    %13 = vector.broadcast %12 : vector<1x128xf32> to vector<8x128xf32>
    %14 = arith.addf %11, %13 : vector<8x128xf32>
    %c0_11 = arith.constant 0 : index
    %c0_12 = arith.constant 0 : index
    %15 = vector.load %arg6[%c0_11, %c0_12] : memref<8x128xf32, #tpu.memory_space<vmem>>, vector<8x128xf32>
    tpu.vector_store %arg6[%c0_11, %c0_12], %14 {strides = array<i32>} : memref<8x128xf32, #tpu.memory_space<vmem>>, vector<8x128xf32>,
    return
  }
  func.func @transform_0(%arg0: i32) -> (i32, i32) {
    %c0_i32 = arith.constant 0 : i32
    %c0_i32_0 = arith.constant 0 : i32
    return %arg0, %c0_i32 : i32, i32
  }
  func.func @transform_1(%arg0: i32) -> (i32, i32) {
    %c0_i32 = arith.constant 0 : i32
    %c0_i32_0 = arith.constant 0 : i32
    %c0_i32_1 = arith.constant 0 : i32
    return %c0_i32, %c0_i32_0 : i32, i32
  }
  func.func @transform_2(%arg0: i32) -> (i32, i32) {
    %c0_i32 = arith.constant 0 : i32
    %c0_i32_0 = arith.constant 0 : i32
    %c0_i32_1 = arith.constant 0 : i32
    return %c0_i32, %c0_i32_0 : i32, i32
  }
  func.func @transform_3(%arg0: i32) -> (i32, i32) {
    %c0_i32 = arith.constant 0 : i32
    %c0_i32_0 = arith.constant 0 : i32
    %c0_i32_1 = arith.constant 0 : i32
    return %c0_i32, %c0_i32_0 : i32, i32
  }
  func.func @transform_4(%arg0: i32) -> (i32, i32) {
    %c0_i32 = arith.constant 0 : i32
    %c0_i32_0 = arith.constant 0 : i32
    %c0_i32_1 = arith.constant 0 : i32
    return %c0_i32, %c0_i32_0 : i32, i32
  }
  func.func @transform_5(%arg0: i32) -> (i32, i32) {
    %c0_i32 = arith.constant 0 : i32
    %c0_i32_0 = arith.constant 0 : i32
    return %arg0, %c0_i32 : i32, i32
  }
}

</mosaic_0001>

<bundles_post_ra>
// kernel: mlp_forward.1
= control target key start
LH: loop header
LB: loop body
LE: loop exit
PB: predicated region body
PF: predicated region fallthrough
CT: control target
= control target key end

     0   :  { %v226_v0 = vmov 0.0   ;;  %vm227_vm0 = vmmov 0   ;;  %vm46_vm1 = vcmask 261120   ;;  %vm131_vm2 = vcmask 523264   ;;  %s288_s1 = inlined_call_operand.vmem [shape: bf16[32,64], index: 1, kind: input, shape index: {}]   ;;  %s289_s0 = inlined_call_operand.vmem [shape: f32[8,32], index: 0, kind: input, shape index: {}]   ;;  %s290_s3 = inlined_call_operand.vmem [shape: bf16[64,128], index: 3, kind: input, shape index: {}]   ;;  %s291_s2 = inlined_call_operand.vmem [shape: f32[1,64], index: 2, kind: input, shape index: {}]   ;;  %s292_s4 = inlined_call_operand.vmem [shape: f32[1,128], index: 4, kind: input, shape index: {}]   ;;  %s293_s5 = inlined_call_operand.vmem [shape: f32[8,128], index: 5, kind: output, shape index: {}]  }
   0x1   :  { %198 = vmatprep.subr.bf16.mxu0 %v226_v0  ;;  %v220_v1 = vld [vmem:[%s288_s1 + $0x8] sm:$0xff]   ;;  %202 = vmatprep.mubr.msk.bf16.mxu0 %vm227_vm0, %v226_v0  ;;  %v221_v2 = vld [vmem:[%s288_s1] sm:$0xff]   ;;  %v222_v4 = vld [vmem:[%s290_s3 + $0x18] sm:$0xff]  }
   0x2   :  { %206 = vmatprep.subr.bf16.mxu1 %v226_v0  ;;  %214 = vmatprep.mubr.msk.bf16.mxu1 %vm227_vm0, %v226_v0  ;;  %v21_v3 = vld [vmem:[%s289_s0] sm:$0xff]  ;;  %v223_v5 = vld [vmem:[%s290_s3 + $0x10] sm:$0xff]   ;;  %v224_v7 = vld [vmem:[%s290_s3 + $0x8] sm:$0xff]  }
   0x3   :  { %199 = vmatpush3.bf16.msra.mxu0 %v220_v1  ;;  %v22_v6 = vpack.c.bf16 %v21_v3, %v21_v3  ;;  %207 = vmatpush3.bf16.msra.mxu1 %v222_v4  ;;  %v225_v8 = vld [vmem:[%s290_s3] sm:$0xff]  }
   0x4   :  { %200 = vmatprep.subr.bf16.mxu0 %v226_v0  ;;  %208 = vmatprep.subr.bf16.mxu1 %v226_v0  ;;  %v180_v9 = vld [vmem:[%s291_s2] ss:$0 sm:$0xff] }
   0x5   :  { %v184_v17 = vld [vmem:[%s292_s4] ss:$0 sm:$0xff] }
   0x7   :  { %201 = vmatpush3.bf16.msra.mxu0 %v221_v2  ;;  %209 = vmatpush3.bf16.msra.mxu1 %v223_v5 }
   0x8   :  { %210 = vmatprep.subr.bf16.mxu1 %v226_v0 }
   0xa   :  { %203 = vmatmul.mubr.msk.bf16.vlgmr.msra.gmra.mxu0 %vm46_vm1, %v22_v6 }
   0xb   :  { %211 = vmatpush3.bf16.msra.mxu1 %v224_v7 }
   0xc   :  { %212 = vmatprep.subr.bf16.mxu1 %v226_v0 }
   0xf   :  { %213 = vmatpush3.bf16.msra.mxu1 %v225_v8 }
  0xca   :  { %v84_v10 = vpop.f32.mrf.mxu0 }
  0xcb   :  { %v85_v11 = vadd.f32 %v180_v9, %v84_v10 }
  0xcc   :  { %v204_v12 = vpop.f32.mrf.mxu0 }
  0xcd   :  { %v90_v13 = vmax.f32 %v85_v11, 0.0 }
  0xce   :  { %v87_v14 = vpop.f32.mrf.mxu0 }
  0xcf   :  { %v91_v15 = vpack.c.bf16 %v90_v13, %v90_v13 }
  0xd0   :  { %v205_v16 = vpop.f32.mrf.mxu0 }
  0xd1   :  { %215 = vmatmul.mubr.msk.bf16.vlgmr.msra.gmra.mxu1 %vm131_vm2, %v91_v15 }
 0x191   :  { %v169_v18 = vpop.f32.mrf.mxu1 }
 0x192   :  { %v170_v19 = vadd.f32 %v184_v17, %v169_v18 }
 0x193   :  { %v216_v20 = vpop.f32.mrf.mxu1 }
 0x194   :  { %175 = vst [vmem:[%s293_s5] sm:$0xff] %v170_v19 }
 0x195   :  { %v172_v21 = vpop.f32.mrf.mxu1 }
 0x197   :  { %v217_v22 = vpop.f32.mrf.mxu1 }

</bundles_post_ra>
